<compile_context>
chip_gen: v6e
topology: v6e:2x2x1
jax: 0.10.0
libtpu: 0.0.40
codegen_flags: <defaults>
</compile_context>

<pallas_src>
import numpy as np
import jax
import jax.numpy as jnp
from jax import lax
from jax.experimental import pallas as pl
from jax.experimental.pallas import tpu as pltpu

LOGIT_TEMP = 0.1
COS_EPS = 1e-8


def _round_up(x, m):
    return ((x + m - 1) // m) * m


# ---------------------------------------------------------------------------
# Fused kernel: final_proj + cosine logits + neg_is_pos masking, row-tiled
# ---------------------------------------------------------------------------
def _fused_logits_kernel(x_ref, w_ref, b_ref, emb_ref, canon_ref, tgt_ref,
                         out_ref):
    # x:     (TN, E)  streamed encoder rows (native dtype)
    # w:     (E, F)   resident projection weight
    # b:     (1, F)   resident projection bias
    # emb:   (W, F)   resident f32 L2-normalized class embeddings, stored at
    #                 rows 1..C (row 0 and rows > C are zero)
    # canon: (1, W)   resident int32; col c+1 = canonical_class_id(c)+1,
    #                 col 0 / padding cols = 0 (never match a target)
    # tgt:   (TN, 1)  streamed int32 = canonical_class_id(target)+1
    # out:   (TN, W)  col 0 = positive logit, cols 1..C = class logits

    # final_proj on the MXU with f32 accumulation.
    px = jnp.dot(x_ref[...], w_ref[...], preferred_element_type=jnp.float32)
    px = px + b_ref[...].astype(jnp.float32)                       # (TN, F)

    # 1 / max(||px||, eps) via EUP rsqrt (no sqrt + divide on the VPU).
    inv_x = lax.rsqrt(jnp.maximum(jnp.sum(px * px, axis=-1, keepdims=True),
                                  COS_EPS * COS_EPS))               # (TN, 1)

    # Cosine / temperature against pre-normalized embeddings: one MXU matmul.
    neg = lax.dot_general(px, emb_ref[...], (((1,), (1,)), ((), ())),
                          preferred_element_type=jnp.float32)        # (TN, W)
    neg = neg * (inv_x * (1.0 / LOGIT_TEMP))

    col = lax.broadcasted_iota(jnp.int32, neg.shape, 1)              # (TN, W)
    tgt = tgt_ref[...]                                               # (TN, 1)

    # Positive logit = the target's column (extracted BEFORE masking).
    pos = jnp.sum(jnp.where(col == tgt, neg, 0.0), axis=-1, keepdims=True)

    # Duplicate-aware "negative is positive" masking via canonical class ids
    # (exact torch value-compare semantics) — pure VPU compare, no gather.
    neg = jnp.where(canon_ref[...] == tgt, -jnp.inf, neg)

    # Single full-width lane-dense store: [pos, class logits..., 0-padding].
    out_ref[...] = jnp.where(col == 0, pos, neg).astype(out_ref.dtype)


def _prepare_tables(label_embeddings, out_width):
    """Resident tables: column-shifted normalized embeddings + canonical ids."""
    C, F = label_embeddings.shape
    emb32 = label_embeddings.astype(jnp.float32)
    inv_e = lax.rsqrt(jnp.maximum(jnp.sum(emb32 * emb32, axis=-1, keepdims=True),
                                  COS_EPS * COS_EPS))
    emb_n = emb32 * inv_e                                            # (C, F)
    emb_pad = jnp.zeros((out_width, F), jnp.float32).at[1:C + 1].set(emb_n)

    # Canonical class id = first class with a bit-identical embedding row.
    eq = jnp.all(label_embeddings[:, None, :] == label_embeddings[None, :, :],
                 axis=-1)                                            # (C, C)
    canon = jnp.argmax(eq, axis=1).astype(jnp.int32)                 # (C,)
    canon_row = jnp.zeros((1, out_width), jnp.int32).at[0, 1:C + 1].set(canon + 1)
    return emb_pad, canon_row, canon


def fused_logits_pallas(x_sel, tgt_canon1, w_ef, b, emb_pad, canon_row,
                        num_classes, tn=512):
    N, E = x_sel.shape
    F = w_ef.shape[1]
    W = emb_pad.shape[0]
    TN = min(tn, _round_up(N, 8))
    N_pad = _round_up(N, TN)
    if N_pad != N:
        x_sel = jnp.pad(x_sel, ((0, N_pad - N), (0, 0)))
        tgt_canon1 = jnp.pad(tgt_canon1, ((0, N_pad - N), (0, 0)))

    out = pl.pallas_call(
        _fused_logits_kernel,
        out_shape=jax.ShapeDtypeStruct((N_pad, W), x_sel.dtype),
        grid=(N_pad // TN,),
        in_specs=[
            pl.BlockSpec((TN, E), lambda i: (i, 0)),   # streamed x rows
            pl.BlockSpec((E, F), lambda i: (0, 0)),    # resident proj weight
            pl.BlockSpec((1, F), lambda i: (0, 0)),    # resident proj bias
            pl.BlockSpec((W, F), lambda i: (0, 0)),    # resident embeddings
            pl.BlockSpec((1, W), lambda i: (0, 0)),    # resident canon ids
            pl.BlockSpec((TN, 1), lambda i: (i, 0)),   # streamed targets
        ],
        out_specs=pl.BlockSpec((TN, W), lambda i: (i, 0)),
        compiler_params=pltpu.CompilerParams(dimension_semantics=("parallel",)),
    )(x_sel, w_ef, b.reshape(1, F), emb_pad, canon_row, tgt_canon1)
    # col 0 = positive logit, cols 1..C = per-class logits (== torch's
    # cat([pos, negs]).transpose(0, 1)); lane/row padding sliced off.
    return out[:N, :num_classes + 1]


# ---------------------------------------------------------------------------
# Module forward
# ---------------------------------------------------------------------------
def logit_generator_forward(params, x, label, mask_m, mask_u,
                            skip_masked=False, skip_nomask=False):
    B, T, E = x.shape
    C, F = params["label_embeddings"].shape
    W = _round_up(C + 1, 128)                  # lane-dense output width
    w_ef = params["proj_w"].T                  # torch Linear weight is (F, E)
    b = params["proj_b"]
    emb_pad, canon_row, canon = _prepare_tables(params["label_embeddings"], W)

    x_flat = x.reshape(B * T, E)
    label_flat = label.reshape(B * T)

    def branch(mask):
        # TODO(synk): boolean-mask selection (proj_x[mask]) has a data-dependent
        # shape; indices are resolved host-side (np.flatnonzero) and padded to a
        # tile multiple on device.
        idx = np.flatnonzero(np.asarray(mask).reshape(-1))
        if idx.size == 0:
            return jnp.zeros((0, C + 1), x.dtype)
        idx_j = jnp.asarray(idx, dtype=jnp.int32)
        x_sel = jnp.take(x_flat, idx_j, axis=0)
        tgt = jnp.take(label_flat, idx_j, axis=0).astype(jnp.int32)
        tgt_c1 = (jnp.take(canon, tgt, axis=0) + 1).reshape(-1, 1)
        return fused_logits_pallas(x_sel, tgt_c1, w_ef, b, emb_pad, canon_row, C)

    logit_m = None if skip_masked else branch(mask_m)
    logit_u = None if skip_nomask else branch(mask_u)
    return logit_m, logit_u


# ---------------------------------------------------------------------------
# Pure-JAX reference (mirrors the PyTorch module) for a sanity check
# ---------------------------------------------------------------------------
def _reference_branch(params, proj_flat, label_flat, mask):
    idx = np.flatnonzero(np.asarray(mask).reshape(-1))
    if idx.size == 0:
        return None
    idx_j = jnp.asarray(idx, dtype=jnp.int32)
    px = jnp.take(proj_flat, idx_j, axis=0).astype(jnp.float32)
    tgt = jnp.take(label_flat, idx_j, axis=0).astype(jnp.int32)
    emb = params["label_embeddings"].astype(jnp.float32)
    pos = jnp.take(emb, tgt, axis=0)
    xn = jnp.maximum(jnp.sqrt(jnp.sum(px * px, -1, keepdims=True)), COS_EPS)
    en = jnp.maximum(jnp.sqrt(jnp.sum(emb * emb, -1)), COS_EPS)[None, :]
    pn = jnp.maximum(jnp.sqrt(jnp.sum(pos * pos, -1, keepdims=True)), COS_EPS)
    pos_sim = jnp.sum(px * pos, -1, keepdims=True) / (xn * pn) / LOGIT_TEMP
    neg_sim = (px @ emb.T) / (xn * en) / LOGIT_TEMP
    neg_is_pos = jnp.all(pos[:, None, :] == emb[None, :, :], axis=-1)
    neg_sim = jnp.where(neg_is_pos, -jnp.inf, neg_sim)
    return jnp.concatenate([pos_sim, neg_sim], axis=1)


# ---------------------------------------------------------------------------
# Example run
# ---------------------------------------------------------------------------
if __name__ == "__main__":
    B, T = 2, 8                 # batch, sequence
    E = 32                      # encoder_embed_dim
    F = 16                      # final_dim
    C = 8                       # num_classes

    key = jax.random.PRNGKey(0)
    k_emb, k_w, k_b, k_x, k_lbl, k_msk = jax.random.split(key, 6)

    bound = 1.0 / np.sqrt(E)
    params = {
        "label_embeddings": jax.random.uniform(k_emb, (C, F), jnp.float32),
        "proj_w": jax.random.uniform(k_w, (F, E), jnp.float32,
                                     minval=-bound, maxval=bound),
        "proj_b": jax.random.uniform(k_b, (F,), jnp.float32,
                                     minval=-bound, maxval=bound),
    }

    x = jax.random.normal(k_x, (B, T, E), jnp.float32)
    label = jax.random.randint(k_lbl, (B, T), 0, C, dtype=jnp.int32)
    mask_m = jax.random.bernoulli(k_msk, 0.4, (B, T))
    mask_u = jnp.logical_not(mask_m)
    mask_m = mask_m.at[0, 0].set(True)
    mask_u = mask_u.at[0, 1].set(True)

    logit_m, logit_u = logit_generator_forward(
        params, x, label, mask_m, mask_u, skip_masked=False, skip_nomask=False)
    jax.block_until_ready((logit_m, logit_u))

    assert logit_m.shape[1] == C + 1 and logit_u.shape[1] == C + 1

    # Sanity check against a pure-JAX reference (loose tol: MXU f32 passes).
    proj_ref = x.reshape(B * T, E) @ params["proj_w"].T + params["proj_b"]
    label_flat = label.reshape(B * T)
    ref_m = _reference_branch(params, proj_ref, label_flat, mask_m)
    ref_u = _reference_branch(params, proj_ref, label_flat, mask_u)
    np.testing.assert_allclose(np.asarray(logit_m), np.asarray(ref_m),
                               rtol=5e-2, atol=2e-1)
    np.testing.assert_allclose(np.asarray(logit_u), np.asarray(ref_u),
                               rtol=5e-2, atol=2e-1)

    print("KERNEL_OK")
</pallas_src>

<mosaic_0001>
module attributes {stable_mosaic.version = 11 : i64} {
  func.func @_fused_logits_kernel(%arg0: i32, %arg1: memref<8x32xf32, #tpu.memory_space<vmem>>, %arg2: memref<32x16xf32, #tpu.memory_space<vmem>>, %arg3: memref<1x16xf32, #tpu.memory_space<vmem>>, %arg4: memref<128x16xf32, #tpu.memory_space<vmem>>, %arg5: memref<1x128xi32, #tpu.memory_space<vmem>>, %arg6: memref<8x1xi32, #tpu.memory_space<vmem>>, %arg7: memref<8x128xf32, #tpu.memory_space<vmem>>) attributes {dimension_semantics = [#tpu.dimension_semantics<parallel>], iteration_bounds = array<i64: 1>, scalar_prefetch = 0 : i64, scratch_operands = 0 : i64, tpu.core_type = #tpu.core_type<tc>, window_params = [{transform_indices = @transform_0, window_bounds = array<i64: 8, 32>}, {pipeline_mode = #tpu.pipeline_mode<synchronous>, transform_indices = @transform_1, window_bounds = array<i64: 32, 16>}, {pipeline_mode = #tpu.pipeline_mode<synchronous>, transform_indices = @transform_2, window_bounds = array<i64: 1, 16>}, {pipeline_mode = #tpu.pipeline_mode<synchronous>, transform_indices = @transform_3, window_bounds = array<i64: 128, 16>}, {pipeline_mode = #tpu.pipeline_mode<synchronous>, transform_indices = @transform_4, window_bounds = array<i64: 1, 128>}, {transform_indices = @transform_5, window_bounds = array<i64: 8, 1>}, {transform_indices = @transform_6, window_bounds = array<i64: 8, 128>}]} {
    %c0 = arith.constant 0 : index
    %c0_0 = arith.constant 0 : index
    %0 = vector.load %arg1[%c0, %c0_0] : memref<8x32xf32, #tpu.memory_space<vmem>>, vector<8x32xf32>
    %c0_1 = arith.constant 0 : index
    %c0_2 = arith.constant 0 : index
    %1 = vector.load %arg2[%c0_1, %c0_2] : memref<32x16xf32, #tpu.memory_space<vmem>>, vector<32x16xf32>
    %cst = arith.constant dense<0.000000e+00> : vector<8x16xf32>
    %2 = tpu.matmul %0, %1, %cst {dimension_numbers = #tpu.dot_dimension_numbers<[1], [0], [0], [1], [0, 0, 1, 1], [], []>} : vector<8x32xf32>, vector<32x16xf32>, vector<8x16xf32> -> vector<8x16xf32>
    %c0_3 = arith.constant 0 : index
    %c0_4 = arith.constant 0 : index
    %3 = vector.load %arg3[%c0_3, %c0_4] : memref<1x16xf32, #tpu.memory_space<vmem>>, vector<1x16xf32>
    %4 = vector.broadcast %3 : vector<1x16xf32> to vector<8x16xf32>
    %5 = arith.addf %2, %4 : vector<8x16xf32>
    %6 = arith.mulf %5, %5 : vector<8x16xf32>
    %cst_5 = arith.constant dense<0.000000e+00> : vector<8xf32>
    %7 = vector.multi_reduction <add>, %6, %cst_5 [1] : vector<8x16xf32> to vector<8xf32>
    %8 = vector.shape_cast %7 : vector<8xf32> to vector<8x1xf32>
    %cst_6 = arith.constant 1.000000e-16 : f32
    %9 = vector.broadcast %cst_6 : f32 to vector<8x1xf32>
    %10 = arith.maximumf %8, %9 : vector<8x1xf32>
    %11 = math.rsqrt %10 : vector<8x1xf32>
    %c0_7 = arith.constant 0 : index
    %c0_8 = arith.constant 0 : index
    %12 = vector.load %arg4[%c0_7, %c0_8] : memref<128x16xf32, #tpu.memory_space<vmem>>, vector<128x16xf32>
    %cst_9 = arith.constant dense<0.000000e+00> : vector<8x128xf32>
    %13 = tpu.matmul %5, %12, %cst_9 {dimension_numbers = #tpu.dot_dimension_numbers<[1], [1], [0], [0], [0, 0, 1, 0], [], []>} : vector<8x16xf32>, vector<128x16xf32>, vector<8x128xf32> -> vector<8x128xf32>
    %cst_10 = arith.constant 1.000000e+01 : f32
    %14 = vector.broadcast %cst_10 : f32 to vector<8x1xf32>
    %15 = arith.mulf %11, %14 : vector<8x1xf32>
    %16 = vector.broadcast %15 : vector<8x1xf32> to vector<8x128xf32>
    %17 = arith.mulf %13, %16 : vector<8x128xf32>
    %18 = tpu.iota {dimensions = array<i32: 1>} : vector<8x128xi32>
    %c0_11 = arith.constant 0 : index
    %c0_12 = arith.constant 0 : index
    %19 = vector.load %arg6[%c0_11, %c0_12] : memref<8x1xi32, #tpu.memory_space<vmem>>, vector<8x1xi32>
    %20 = vector.broadcast %19 : vector<8x1xi32> to vector<8x128xi32>
    %21 = arith.cmpi eq, %18, %20 : vector<8x128xi32>
    %cst_13 = arith.constant 0.000000e+00 : f32
    %22 = vector.broadcast %cst_13 : f32 to vector<8x128xf32>
    %23 = arith.select %21, %17, %22 : vector<8x128xi1>, vector<8x128xf32>
    %cst_14 = arith.constant dense<0.000000e+00> : vector<8xf32>
    %24 = vector.multi_reduction <add>, %23, %cst_14 [1] : vector<8x128xf32> to vector<8xf32>
    %25 = vector.shape_cast %24 : vector<8xf32> to vector<8x1xf32>
    %c0_15 = arith.constant 0 : index
    %c0_16 = arith.constant 0 : index
    %26 = vector.load %arg5[%c0_15, %c0_16] : memref<1x128xi32, #tpu.memory_space<vmem>>, vector<1x128xi32>
    %27 = vector.broadcast %26 : vector<1x128xi32> to vector<8x128xi32>
    %28 = vector.broadcast %19 : vector<8x1xi32> to vector<8x128xi32>
    %29 = arith.cmpi eq, %27, %28 : vector<8x128xi32>
    %cst_17 = arith.constant 0xFF800000 : f32
    %30 = vector.broadcast %cst_17 : f32 to vector<8x128xf32>
    %31 = arith.select %29, %30, %17 : vector<8x128xi1>, vector<8x128xf32>
    %c0_i32 = arith.constant 0 : i32
    %32 = vector.broadcast %c0_i32 : i32 to vector<8x128xi32>
    %33 = arith.cmpi eq, %18, %32 : vector<8x128xi32>
    %34 = vector.shape_cast %25 : vector<8x1xf32> to vector<8x1xf32>
    %35 = vector.broadcast %34 : vector<8x1xf32> to vector<8x128xf32>
    %36 = arith.select %33, %35, %31 : vector<8x128xi1>, vector<8x128xf32>
    %c0_18 = arith.constant 0 : index
    %c0_19 = arith.constant 0 : index
    %37 = vector.load %arg7[%c0_18, %c0_19] : memref<8x128xf32, #tpu.memory_space<vmem>>, vector<8x128xf32>
    tpu.vector_store %arg7[%c0_18, %c0_19], %36 {strides = array<i32>} : memref<8x128xf32, #tpu.memory_space<vmem>>, vector<8x128xf32>,
    return
  }
  func.func @transform_0(%arg0: i32) -> (i32, i32) {
    %c0_i32 = arith.constant 0 : i32
    %c0_i32_0 = arith.constant 0 : i32
    return %arg0, %c0_i32 : i32, i32
  }
  func.func @transform_1(%arg0: i32) -> (i32, i32) {
    %c0_i32 = arith.constant 0 : i32
    %c0_i32_0 = arith.constant 0 : i32
    %c0_i32_1 = arith.constant 0 : i32
    return %c0_i32, %c0_i32_0 : i32, i32
  }
  func.func @transform_2(%arg0: i32) -> (i32, i32) {
    %c0_i32 = arith.constant 0 : i32
    %c0_i32_0 = arith.constant 0 : i32
    %c0_i32_1 = arith.constant 0 : i32
    return %c0_i32, %c0_i32_0 : i32, i32
  }
  func.func @transform_3(%arg0: i32) -> (i32, i32) {
    %c0_i32 = arith.constant 0 : i32
    %c0_i32_0 = arith.constant 0 : i32
    %c0_i32_1 = arith.constant 0 : i32
    return %c0_i32, %c0_i32_0 : i32, i32
  }
  func.func @transform_4(%arg0: i32) -> (i32, i32) {
    %c0_i32 = arith.constant 0 : i32
    %c0_i32_0 = arith.constant 0 : i32
    %c0_i32_1 = arith.constant 0 : i32
    return %c0_i32, %c0_i32_0 : i32, i32
  }
  func.func @transform_5(%arg0: i32) -> (i32, i32) {
    %c0_i32 = arith.constant 0 : i32
    %c0_i32_0 = arith.constant 0 : i32
    return %arg0, %c0_i32 : i32, i32
  }
  func.func @transform_6(%arg0: i32) -> (i32, i32) {
    %c0_i32 = arith.constant 0 : i32
    %c0_i32_0 = arith.constant 0 : i32
    return %arg0, %c0_i32 : i32, i32
  }
}

</mosaic_0001>

<bundles_post_ra>
// kernel: tpu_custom_call.1
= control target key start
LH: loop header
LB: loop body
LE: loop exit
PB: predicated region body
PF: predicated region fallthrough
CT: control target
= control target key end

     0   :  { %v407_v1 = vmov 0.0   ;;  %vm408_vm0 = vmmov 0   ;;  %vm111_vm1 = vcmask 130048   ;;  %vm36_vm2 = vcmask 261120   ;;  %s561_s0 = inlined_call_operand.vmem [shape: f32[8,32], index: 0, kind: input, shape index: {}]   ;;  %s562_s1 = inlined_call_operand.vmem [shape: f32[32,16], index: 1, kind: input, shape index: {}]   ;;  %s563_s2 = inlined_call_operand.vmem [shape: f32[1,16], index: 2, kind: input, shape index: {}]   ;;  %s564_s3 = inlined_call_operand.vmem [shape: f32[128,16], index: 3, kind: input, shape index: {}]   ;;  %s565_s4 = inlined_call_operand.vmem [shape: s32[1,128], index: 4, kind: input, shape index: {}]   ;;  %s566_s5 = inlined_call_operand.vmem [shape: s32[8,1], index: 5, kind: input, shape index: {}]   ;;  %s567_s6 = inlined_call_operand.hbm [shape: f32[8,128], index: 6, kind: output, shape index: {}]  }
   0x1   :  { %v28_v0 = vld [vmem:[%s562_s1 + $0x18] sm:$0xff]  ;;  %332 = vmatprep.subr.mxu0 %v407_v1  ;;  %v27_v2 = vld [vmem:[%s562_s1 + $0x10] sm:$0xff]  ;;  %340 = vmatprep.mubr.msk.f32.mxu0 %vm408_vm0, %v407_v1  ;;  %v26_v4 = vld [vmem:[%s562_s1 + $0x8] sm:$0xff] }
   0x2   :  { %v132_v3 = vld [vmem:[%s564_s3 + $0x78] sm:$0xff]  ;;  %333 = vmatpush3.msra.mxu0 %v28_v0  ;;  %343 = vmatprep.subr.mxu1 %v407_v1  ;;  %v131_v5 = vld [vmem:[%s564_s3 + $0x70] sm:$0xff]  ;;  %v25_v6 = vld [vmem:[%s562_s1] sm:$0xff] }
   0x3   :  { %334 = vmatprep.subr.mxu0 %v407_v1  ;;  %344 = vmatpush3.xpose.msk.msra.mxu1 %vm111_vm1, %v132_v3  ;;  %v24_v7 = vld [vmem:[%s561_s0] sm:$0xff] }
   0x4   :  { %335 = vmatpush3.msra.mxu0 %v27_v2  ;;  %345 = vmatprep.subr.mxu1 %v407_v1 }
   0x5   :  { %336 = vmatprep.subr.mxu0 %v407_v1  ;;  %375 = vmatprep.mubr.msk.f32.mxu1 %vm408_vm0, %v407_v1 }
   0x6   :  { %337 = vmatpush3.msra.mxu0 %v26_v4 }
   0x7   :  { %338 = vmatprep.subr.mxu0 %v407_v1  ;;  %346 = vmatpush3.xpose.msk.msra.mxu1 %vm111_vm1, %v131_v5 }
   0x8   :  { %11 = vsyncpa [#allocation3], 0  ;;  %339 = vmatpush3.msra.mxu0 %v25_v6  ;;  %347 = vmatprep.subr.mxu1 %v407_v1  ;;  %v130_v8 = vld [vmem:[%s564_s3 + $0x68] sm:$0xff]  ;;  %v129_v9 = vld [vmem:[%s564_s3 + $0x60] sm:$0xff]  ;;  %v409_v22 = vmov 0   ;;  %v256_v32 = vlaneseq }
   0x9   :  { %341 = vmatmul.mubr.msk.f32.vlgmr.msra.gmra.mxu0 %vm36_vm2, %v24_v7  ;;  %v128_v10 = vld [vmem:[%s564_s3 + $0x58] sm:$0xff]  ;;  %v127_v11 = vld [vmem:[%s564_s3 + $0x50] sm:$0xff]  ;;  %v126_v12 = vld [vmem:[%s564_s3 + $0x48] sm:$0xff]  ;;  %382 = vset.pattern.permute.xlu0 %v409_v22 }
   0xa   :  { %v125_v13 = vld [vmem:[%s564_s3 + $0x40] sm:$0xff]  ;;  %v124_v14 = vld [vmem:[%s564_s3 + $0x38] sm:$0xff]  ;;  %v123_v15 = vld [vmem:[%s564_s3 + $0x30] sm:$0xff]  ;;  %v257_v34 = vand.u32 127, %v256_v32 }
   0xb   :  { %348 = vmatpush3.xpose.msk.msra.mxu1 %vm111_vm1, %v130_v8  ;;  %v122_v16 = vld [vmem:[%s564_s3 + $0x28] sm:$0xff]  ;;  %v121_v17 = vld [vmem:[%s564_s3 + $0x20] sm:$0xff]  ;;  %v120_v18 = vld [vmem:[%s564_s3 + $0x18] sm:$0xff] }
   0xc   :  { %349 = vmatprep.subr.mxu1 %v407_v1  ;;  %v119_v19 = vld [vmem:[%s564_s3 + $0x10] sm:$0xff]  ;;  %v118_v20 = vld [vmem:[%s564_s3 + $0x8] sm:$0xff]  ;;  %v117_v21 = vld [vmem:[%s564_s3] sm:$0xff]  ;;  %vm273_vm5 = vcmp.eq.s32.totalorder %v257_v34, 0 }
   0xd   :  { %v290_v23 = vld [vmem:[%s563_s2] ss:$0 sm:$0xff] }
   0xe   :  { %v258_v29 = vld [vmem:[%s566_s5] sm:$0xff]  ;;  %s410_s5 = smov [#allocation2]  }
   0xf   :  { %350 = vmatpush3.xpose.msk.msra.mxu1 %vm111_vm1, %v129_v9  ;;  %v309_v35 = vld [vmem:[%s565_s4] ss:$0 sm:$0xff]  ;;  %s282_s15 = sshll.u32 %s410_s5, 4  ;;  %s283_s15 = int_to_ptr.vmem [resolvable:$true] %s282_s15 }
  0x10   :  { %351 = vmatprep.subr.mxu1 %v407_v1  ;;  %s385_s16 = scalar_lea.vmem %s283_s15, 128  ;;  %p390_p1 = scmp.lt.s32.totalorder %s283_s15, %s283_s15 }
  0x11   :  { %p386_p0 = scmp.ne.s32.totalorder %s283_s15, %s385_s16  ;;  %p391_p2 = scmp.lt.s32.totalorder %s385_s16, %s385_s16 }
  0x13   :  { %352 = vmatpush3.xpose.msk.msra.mxu1 %vm111_vm1, %v128_v10  ;;  %p392_p3 = por %p391_p2, %p390_p1 }
  0x14   :  { %353 = vmatprep.subr.mxu1 %v407_v1 }
  0x15   :  { %p393_p4 = pnand %p392_p3, %p386_p0 }
  0x17   :  { %354 = vmatpush3.xpose.msk.msra.mxu1 %vm111_vm1, %v127_v11 }
  0x18   :  { %355 = vmatprep.subr.mxu1 %v407_v1 }
  0x1b   :  { %356 = vmatpush3.xpose.msk.msra.mxu1 %vm111_vm1, %v126_v12 }
  0x1c   :  { %357 = vmatprep.subr.mxu1 %v407_v1 }
  0x1f   :  { %358 = vmatpush3.xpose.msk.msra.mxu1 %vm111_vm1, %v125_v13 }
  0x20   :  { %359 = vmatprep.subr.mxu1 %v407_v1 }
  0x23   :  { %360 = vmatpush3.xpose.msk.msra.mxu1 %vm111_vm1, %v124_v14 }
  0x24   :  { %361 = vmatprep.subr.mxu1 %v407_v1 }
  0x27   :  { %362 = vmatpush3.xpose.msk.msra.mxu1 %vm111_vm1, %v123_v15 }
  0x28   :  { %363 = vmatprep.subr.mxu1 %v407_v1 }
  0x2b   :  { %364 = vmatpush3.xpose.msk.msra.mxu1 %vm111_vm1, %v122_v16 }
  0x2c   :  { %365 = vmatprep.subr.mxu1 %v407_v1 }
  0x2f   :  { %366 = vmatpush3.xpose.msk.msra.mxu1 %vm111_vm1, %v121_v17 }
  0x30   :  { %367 = vmatprep.subr.mxu1 %v407_v1 }
  0x33   :  { %368 = vmatpush3.xpose.msk.msra.mxu1 %vm111_vm1, %v120_v18 }
  0x34   :  { %369 = vmatprep.subr.mxu1 %v407_v1 }
  0x37   :  { %370 = vmatpush3.xpose.msk.msra.mxu1 %vm111_vm1, %v119_v19 }
  0x38   :  { %371 = vmatprep.subr.mxu1 %v407_v1 }
  0x3b   :  { %372 = vmatpush3.xpose.msk.msra.mxu1 %vm111_vm1, %v118_v20 }
  0x3c   :  { %373 = vmatprep.subr.mxu1 %v407_v1 }
  0x3f   :  { %374 = vmatpush3.xpose.msk.msra.mxu1 %vm111_vm1, %v117_v21 }
  0xc9   :  { %v106_v24 = vpop.f32.mrf.mxu0 }
  0xca   :  { %v107_v25 = vadd.f32 %v290_v23, %v106_v24 }
  0xcb   :  { %v342_v26 = vpop.f32.mrf.mxu0 }
  0xcc   :  { %376 = vmatmul.mubr.msk.f32.vlgmr.msra.gmra.mxu1 %vm111_vm1, %v107_v25  ;;  %v110_v27 = vmul.f32 %v107_v25, %v107_v25 }
  0xce   :  { %v112_v28 = vsel %vm111_vm1, %v110_v27, 0.0 }
  0xcf   :  { %113 = vadd.xlane.f32.xlu0 %v112_v28 }
  0xe5   :  { %260 = vperm.xlu0 %382, %v258_v29  }
 0x158   :  { %v114_v30 = vpop.xlane.xlu0 %113 }
 0x159   :  { %v115_v31 = vmax.f32 %v114_v30, 1e-16 }
 0x15b   :  { %383 = vrsqrt.f32 %v115_v31 }
 0x160   :  { %v261_v36 = vpop.permute.xlu0 %260 }
 0x161   :  { %vm262_vm3 = vcmp.eq.s32.totalorder %v257_v34, %v261_v36  ;;  %vm271_vm4 = vcmp.eq.s32.totalorder %v309_v35, %v261_v36 }
 0x168   :  { %v384_v33 = vpop.eup %383 }
 0x169   :  { %v254_v37 = vmul.f32 10.0, %v384_v33 }
 0x18c   :  { %v250_v38 = vpop.f32.mrf.mxu1 }
 0x18d   :  { %v255_v39 = vmul.f32 %v254_v37, %v250_v38 }
 0x18e   :  { %v377_v40 = vpop.f32.mrf.mxu1 }
 0x18f   :  { %v272_v41 = vsel %vm271_vm4, -inf, %v255_v39  ;;  %v263_v42 = vsel %vm262_vm3, %v255_v39, 0.0 }
 0x190   :  { %264 = vadd.xlane.f32.xlu1 %v263_v42 }
 0x219   :  { %v265_v43 = vpop.xlane.xlu1 %264 }
 0x21a   :  { %v274_v44 = vsel %vm273_vm5, %v265_v43, %v272_v41 }
 0x21b   :  { %275 = vst [vmem:[#allocation2] sm:$0xff] %v274_v44 }
 0x21c   :  { %396 = shalt.err (!%p393_p4)
}
 0x21d   :  { %285 = dma.vmem_to_hbm [thread:$0]  %s283_s15, 128, %s567_s6, [#allocation3]  }
 0x21e   :  { %405 = dma.done.wait [#allocation3], 128  }
 0x21f   :  { %406 = vsyncadd [#allocation3], 4294967168 }
 0x220   :  { %289 = vsyncpa [#allocation3], 1 }

</bundles_post_ra>
